<compile_context>
chip_gen: v7x
topology: tpu7x:2x2x1
jax: 0.10.0
libtpu: 0.0.40
codegen_flags: <defaults>
</compile_context>

<pallas_src>
import functools
import math

import jax
import jax.numpy as jnp
import numpy as np
from jax import lax
from jax.experimental import pallas as pl
from jax.experimental.pallas import tpu as pltpu


def _sdpa_kernel(q_ref, k_ref, v_ref, mask_ref, ctx_ref, attn_ref, *,
                 scale, compute_dtype):
    # Blocks: q (1,TQ,Dk), k (1,Lk,Dk), v (1,Lk,Dv), mask (1,TQ,Lk),
    #         ctx (1,TQ,Dv), attn (1,TQ,Lk).
    # Scale folded into Q in f32 (TQ*Dk multiplies, and the scale is not bf16-
    # quantized), then a single cast to the MXU compute dtype.
    q = (q_ref[0] * jnp.float32(scale)).astype(compute_dtype)   # [TQ, Dk]
    k = k_ref[0].astype(compute_dtype)                          # [Lk, Dk]
    v = v_ref[0].astype(compute_dtype)                          # [Lk, Dv]
    m_raw = mask_ref[0]                                         # [TQ, Lk]
    masked = m_raw if m_raw.dtype == jnp.bool_ else (m_raw != 0)

    # scores = (Q/sqrt(dk)) @ K^T, contracting last dims -> no K transpose copy.
    scores = lax.dot_general(
        q, k,
        dimension_numbers=(((1,), (1,)), ((), ())),
        preferred_element_type=jnp.float32,
    )                                                           # [TQ, Lk] f32

    # masked_fill_(attn_mask, -1e9)
    scores = jnp.where(masked, jnp.float32(-1e9), scores)

    # Numerically stable softmax over the last dim. Fully masked rows become a
    # uniform 1/Lk distribution (denom = Lk), matching the -1e9 reference.
    m = jnp.max(scores, axis=-1, keepdims=True)
    e = jnp.exp(scores - m)                                     # [TQ, Lk] f32

    # Single f32 -> compute_dtype cast of the probabilities, reused for the MXU
    # input and (when dtypes match) the attn output.
    e_lo = e.astype(compute_dtype)

    # P@V does not wait on the row-sum / reciprocal / normalize chain: the
    # 1/denom factor is applied to the [TQ, Dv] GEMM result instead.
    ctx_un = jnp.dot(e_lo, v, preferred_element_type=jnp.float32)  # [TQ, Dv]

    denom = jnp.sum(e, axis=-1, keepdims=True)                  # [TQ, 1]
    # EUP approximate reciprocal + one Newton-Raphson step on the narrow column
    # (rows of attn sum to 1 only to ~1e-7 relative -- documented).
    inv = pl.reciprocal(denom, approx=True)
    inv = inv * (2.0 - denom * inv)

    ctx_ref[0] = (ctx_un * inv).astype(ctx_ref.dtype)
    if attn_ref.dtype == e_lo.dtype:
        attn_ref[0] = e_lo * inv.astype(e_lo.dtype)   # no second TQ*Lk convert
    else:
        attn_ref[0] = (e * inv).astype(attn_ref.dtype)


def _vmem_capacity_bytes():
    """Physical VMEM of the attached TPU; conservative 64 MiB (v7x) fallback."""
    try:
        return int(pltpu.get_tpu_info().vmem_capacity_bytes)
    except Exception:
        return 64 * 1024 * 1024


def _choose_tiling(Lq, Lk, Dk, Dv, in_bytes, ctx_bytes, attn_bytes, mask_bytes):
    """Pick the q tile and a VMEM budget from the actual block working set."""
    cap = _vmem_capacity_bytes()
    budget = int(cap * 0.75)  # headroom for compiler-internal scratch

    def working_set(tq):
        # Pallas double-buffers every BlockSpec operand (2x), including the
        # q-invariant K/V blocks.
        blocks = 2 * (tq * Dk * in_bytes          # Q tile
                      + Lk * Dk * in_bytes        # K (resident across q steps)
                      + Lk * Dv * in_bytes        # V (resident across q steps)
                      + tq * Lk * mask_bytes      # mask tile
                      + tq * Dv * ctx_bytes       # ctx out tile
                      + tq * Lk * attn_bytes)     # attn out tile
        interm = 3 * tq * Lk * 4 + tq * Dv * 4    # f32 scores / e / attn + acc
        return blocks + interm

    cands = []
    if Lq <= 512:
        cands.append(Lq)                          # full extent: biggest tile
    cands += [t for t in (512, 256, 128, 64, 32) if t < Lq and Lq % t == 0]
    if not cands:
        cands = [Lq]  # TODO(synk): pad Lq for long, non-32-divisible sequences.

    tq = cands[-1]
    for t in cands:
        if working_set(t) <= budget:
            tq = t
            break

    vmem_limit = min(int(cap * 0.9),
                     max(working_set(tq) + (8 << 20), 32 << 20))
    return tq, int(vmem_limit)


def scaled_dot_product_attention(Q, K, V, attn_mask, *,
                                 matmul_dtype=jnp.bfloat16, attn_dtype=None):
    """Pallas TPU forward of the PyTorch ScaledDotProductAttention module.

    matmul_dtype: dtype used on the MXU for both GEMMs (f32 accumulation).
        Default bf16 (MXU-native); pass jnp.float32 for reference precision.
    attn_dtype: dtype of the returned attention matrix (default Q.dtype).
        Passing bf16 halves the dominant S^2 writeback traffic (v5e/v6e win).
    """
    B, H, Lq, Dk = Q.shape
    Lk = K.shape[2]
    Dv = V.shape[3]
    if attn_mask.shape != (B, H, Lq, Lk):
        attn_mask = jnp.broadcast_to(attn_mask, (B, H, Lq, Lk))

    scale = 1.0 / math.sqrt(Dk)
    attn_dtype = Q.dtype if attn_dtype is None else attn_dtype
    compute_dtype = Q.dtype if matmul_dtype is None else matmul_dtype

    # Flatten (B, H) -> one leading parallel grid axis (metadata-only reshape).
    BH = B * H
    q3 = Q.reshape(BH, Lq, Dk)
    k3 = K.reshape(BH, Lk, Dk)
    v3 = V.reshape(BH, Lk, Dv)
    m3 = attn_mask.reshape(BH, Lq, Lk)  # bool/int passed as-is (no astype copy)

    TQ, vmem_limit = _choose_tiling(
        Lq, Lk, Dk, Dv,
        in_bytes=np.dtype(Q.dtype).itemsize,
        ctx_bytes=np.dtype(Q.dtype).itemsize,
        attn_bytes=np.dtype(attn_dtype).itemsize,
        mask_bytes=np.dtype(m3.dtype).itemsize,
    )
    nq = Lq // TQ

    kernel = functools.partial(_sdpa_kernel, scale=scale,
                               compute_dtype=compute_dtype)

    ctx3, attn3 = pl.pallas_call(
        kernel,
        out_shape=(
            jax.ShapeDtypeStruct((BH, Lq, Dv), Q.dtype),
            jax.ShapeDtypeStruct((BH, Lq, Lk), attn_dtype),
        ),
        grid_spec=pltpu.PrefetchScalarGridSpec(
            num_scalar_prefetch=0,
            grid=(BH, nq),
            in_specs=[
                # Q/mask/attn tiles move with the q axis; K/V index_maps are
                # q-invariant so Pallas skips their re-DMA across q steps.
                pl.BlockSpec((1, TQ, Dk), lambda bh, qi: (bh, qi, 0)),
                pl.BlockSpec((1, Lk, Dk), lambda bh, qi: (bh, 0, 0)),
                pl.BlockSpec((1, Lk, Dv), lambda bh, qi: (bh, 0, 0)),
                pl.BlockSpec((1, TQ, Lk), lambda bh, qi: (bh, qi, 0)),
            ],
            out_specs=[
                pl.BlockSpec((1, TQ, Dv), lambda bh, qi: (bh, qi, 0)),
                pl.BlockSpec((1, TQ, Lk), lambda bh, qi: (bh, qi, 0)),
            ],
        ),
        compiler_params=pltpu.CompilerParams(
            # Both axes independent -> shard across both v7x TensorCores.
            dimension_semantics=("parallel", "parallel"),
            vmem_limit_bytes=vmem_limit,
        ),
    )(q3, k3, v3, m3)

    return ctx3.reshape(B, H, Lq, Dv), attn3.reshape(B, H, Lq, Lk)


def _reference_np(Q, K, V, attn_mask, d_k):
    """Pure-numpy (float64) reference of the PyTorch module."""
    Qn = np.asarray(Q, np.float64)
    Kn = np.asarray(K, np.float64)
    Vn = np.asarray(V, np.float64)
    Mn = np.asarray(attn_mask)
    scores = np.einsum("bhqd,bhkd->bhqk", Qn, Kn) / np.sqrt(d_k)
    scores = np.where(Mn, -1e9, scores)
    scores = scores - scores.max(-1, keepdims=True)
    e = np.exp(scores)
    attn = e / e.sum(-1, keepdims=True)
    ctx = np.einsum("bhqk,bhkd->bhqd", attn, Vn)
    return ctx.astype(np.float32), attn.astype(np.float32)


if __name__ == "__main__":
    # Small shapes consistent with the module's forward signature.
    B, H, Lq, d_k, d_v = 2, 2, 8, 32, 32

    key = jax.random.PRNGKey(0)
    kq, kk, kv = jax.random.split(key, 3)
    Q = jax.random.normal(kq, (B, H, Lq, d_k), dtype=jnp.float32)
    K = jax.random.normal(kk, (B, H, Lq, d_k), dtype=jnp.float32)
    V = jax.random.normal(kv, (B, H, Lq, d_v), dtype=jnp.float32)

    # Deterministic mask: causal-style upper-triangular "masked" positions.
    row = jnp.arange(Lq)[:, None]
    col = jnp.arange(Lq)[None, :]
    attn_mask = jnp.broadcast_to(col > row, (B, H, Lq, Lq))

    ctx_ref, attn_ref = _reference_np(Q, K, V, attn_mask, d_k)

    # Fast (default) path: bf16 MXU GEMMs with f32 accumulation.
    ctx, attn = scaled_dot_product_attention(Q, K, V, attn_mask)
    jax.block_until_ready((ctx, attn))
    np.testing.assert_allclose(np.asarray(ctx), ctx_ref, rtol=5e-2, atol=5e-2)
    np.testing.assert_allclose(np.asarray(attn), attn_ref, rtol=5e-2, atol=2e-2)

    # Reference-precision path: f32 GEMMs, tight tolerance.
    ctx32, attn32 = scaled_dot_product_attention(Q, K, V, attn_mask,
                                                 matmul_dtype=jnp.float32)
    jax.block_until_ready((ctx32, attn32))
    np.testing.assert_allclose(np.asarray(ctx32), ctx_ref, rtol=2e-3, atol=2e-3)
    np.testing.assert_allclose(np.asarray(attn32), attn_ref, rtol=2e-3, atol=2e-3)

    print("KERNEL_OK")
</pallas_src>

<mosaic_0001>
module attributes {stable_mosaic.version = 11 : i64} {
  func.func @_sdpa_kernel(%arg0: i32, %arg1: i32, %arg2: memref<1x8x32xf32, #tpu.memory_space<vmem>>, %arg3: memref<1x8x32xf32, #tpu.memory_space<vmem>>, %arg4: memref<1x8x32xf32, #tpu.memory_space<vmem>>, %arg5: memref<1x8x8xi32, #tpu.memory_space<vmem>>, %arg6: memref<1x8x32xf32, #tpu.memory_space<vmem>>, %arg7: memref<1x8x8xf32, #tpu.memory_space<vmem>>) attributes {dimension_semantics = [#tpu.dimension_semantics<parallel>, #tpu.dimension_semantics<parallel>], iteration_bounds = array<i64: 4, 1>, scalar_prefetch = 0 : i64, scratch_operands = 0 : i64, tpu.core_type = #tpu.core_type<tc>, window_params = [{transform_indices = @transform_0, window_bounds = array<i64: 1, 8, 32>}, {transform_indices = @transform_1, window_bounds = array<i64: 1, 8, 32>}, {transform_indices = @transform_2, window_bounds = array<i64: 1, 8, 32>}, {transform_indices = @transform_3, window_bounds = array<i64: 1, 8, 8>}, {transform_indices = @transform_4, window_bounds = array<i64: 1, 8, 32>}, {transform_indices = @transform_5, window_bounds = array<i64: 1, 8, 8>}]} {
    %c0 = arith.constant 0 : index
    %c0_0 = arith.constant 0 : index
    %c0_1 = arith.constant 0 : index
    %0 = vector.load %arg2[%c0, %c0_0, %c0_1] : memref<1x8x32xf32, #tpu.memory_space<vmem>>, vector<1x8x32xf32>
    %1 = vector.shape_cast %0 : vector<1x8x32xf32> to vector<8x32xf32>
    %cst = arith.constant 0.176776692 : f32
    %2 = vector.broadcast %cst : f32 to vector<8x32xf32>
    %3 = arith.mulf %1, %2 : vector<8x32xf32>
    %4 = arith.truncf %3 : vector<8x32xf32> to vector<8x32xbf16>
    %c0_2 = arith.constant 0 : index
    %c0_3 = arith.constant 0 : index
    %c0_4 = arith.constant 0 : index
    %5 = vector.load %arg3[%c0_2, %c0_3, %c0_4] : memref<1x8x32xf32, #tpu.memory_space<vmem>>, vector<1x8x32xf32>
    %6 = vector.shape_cast %5 : vector<1x8x32xf32> to vector<8x32xf32>
    %7 = arith.truncf %6 : vector<8x32xf32> to vector<8x32xbf16>
    %c0_5 = arith.constant 0 : index
    %c0_6 = arith.constant 0 : index
    %c0_7 = arith.constant 0 : index
    %8 = vector.load %arg4[%c0_5, %c0_6, %c0_7] : memref<1x8x32xf32, #tpu.memory_space<vmem>>, vector<1x8x32xf32>
    %9 = vector.shape_cast %8 : vector<1x8x32xf32> to vector<8x32xf32>
    %10 = arith.truncf %9 : vector<8x32xf32> to vector<8x32xbf16>
    %c0_8 = arith.constant 0 : index
    %c0_9 = arith.constant 0 : index
    %c0_10 = arith.constant 0 : index
    %11 = vector.load %arg5[%c0_8, %c0_9, %c0_10] : memref<1x8x8xi32, #tpu.memory_space<vmem>>, vector<1x8x8xi32>
    %12 = vector.shape_cast %11 : vector<1x8x8xi32> to vector<8x8xi32>
    %cst_11 = arith.constant dense<0> : vector<8x8xi32>
    %13 = arith.cmpi ne, %12, %cst_11 : vector<8x8xi32>
    %cst_12 = arith.constant dense<0.000000e+00> : vector<8x8xf32>
    %14 = tpu.matmul %4, %7, %cst_12 {dimension_numbers = #tpu.dot_dimension_numbers<[1], [1], [0], [0], [0, 0, 1, 0], [], []>} : vector<8x32xbf16>, vector<8x32xbf16>, vector<8x8xf32> -> vector<8x8xf32>
    %cst_13 = arith.constant -1.000000e+09 : f32
    %15 = vector.broadcast %cst_13 : f32 to vector<8x8xf32>
    %16 = arith.select %13, %15, %14 : vector<8x8xi1>, vector<8x8xf32>
    %cst_14 = arith.constant dense<0xFF800000> : vector<8xf32>
    %17 = vector.multi_reduction <maximumf>, %16, %cst_14 [1] : vector<8x8xf32> to vector<8xf32>
    %18 = vector.shape_cast %17 : vector<8xf32> to vector<8x1xf32>
    %19 = vector.broadcast %18 : vector<8x1xf32> to vector<8x8xf32>
    %20 = arith.subf %16, %19 : vector<8x8xf32>
    %21 = math.exp %20 : vector<8x8xf32>
    %22 = arith.truncf %21 : vector<8x8xf32> to vector<8x8xbf16>
    %cst_15 = arith.constant dense<0.000000e+00> : vector<8x32xf32>
    %23 = tpu.matmul %22, %10, %cst_15 {dimension_numbers = #tpu.dot_dimension_numbers<[1], [0], [0], [1], [0, 0, 1, 1], [], []>} : vector<8x8xbf16>, vector<8x32xbf16>, vector<8x32xf32> -> vector<8x32xf32>
    %cst_16 = arith.constant dense<0.000000e+00> : vector<8xf32>
    %24 = vector.multi_reduction <add>, %21, %cst_16 [1] : vector<8x8xf32> to vector<8xf32>
    %25 = vector.shape_cast %24 : vector<8xf32> to vector<8x1xf32>
    %26 = tpu.reciprocal %25 {approx = true} : vector<8x1xf32> -> vector<8x1xf32>
    %27 = arith.mulf %25, %26 : vector<8x1xf32>
    %cst_17 = arith.constant 2.000000e+00 : f32
    %28 = vector.broadcast %cst_17 : f32 to vector<8x1xf32>
    %29 = arith.subf %28, %27 : vector<8x1xf32>
    %30 = arith.mulf %26, %29 : vector<8x1xf32>
    %31 = vector.broadcast %30 : vector<8x1xf32> to vector<8x32xf32>
    %32 = arith.mulf %23, %31 : vector<8x32xf32>
    %c0_18 = arith.constant 0 : index
    %c0_19 = arith.constant 0 : index
    %c0_20 = arith.constant 0 : index
    %33 = vector.load %arg6[%c0_18, %c0_19, %c0_20] : memref<1x8x32xf32, #tpu.memory_space<vmem>>, vector<1x8x32xf32>
    %34 = vector.shape_cast %33 : vector<1x8x32xf32> to vector<8x32xf32>
    %35 = vector.shape_cast %32 : vector<8x32xf32> to vector<1x8x32xf32>
    tpu.vector_store %arg6[%c0_18, %c0_19, %c0_20], %35 {strides = array<i32>} : memref<1x8x32xf32, #tpu.memory_space<vmem>>, vector<1x8x32xf32>,
    %36 = vector.broadcast %30 : vector<8x1xf32> to vector<8x8xf32>
    %37 = arith.mulf %21, %36 : vector<8x8xf32>
    %c0_21 = arith.constant 0 : index
    %c0_22 = arith.constant 0 : index
    %c0_23 = arith.constant 0 : index
    %38 = vector.load %arg7[%c0_21, %c0_22, %c0_23] : memref<1x8x8xf32, #tpu.memory_space<vmem>>, vector<1x8x8xf32>
    %39 = vector.shape_cast %38 : vector<1x8x8xf32> to vector<8x8xf32>
    %40 = vector.shape_cast %37 : vector<8x8xf32> to vector<1x8x8xf32>
    tpu.vector_store %arg7[%c0_21, %c0_22, %c0_23], %40 {strides = array<i32>} : memref<1x8x8xf32, #tpu.memory_space<vmem>>, vector<1x8x8xf32>,
    return
  }
  func.func @transform_0(%arg0: i32, %arg1: i32) -> (i32, i32, i32) {
    %c0_i32 = arith.constant 0 : i32
    %c0_i32_0 = arith.constant 0 : i32
    return %arg0, %arg1, %c0_i32 : i32, i32, i32
  }
  func.func @transform_1(%arg0: i32, %arg1: i32) -> (i32, i32, i32) {
    %c0_i32 = arith.constant 0 : i32
    %c0_i32_0 = arith.constant 0 : i32
    %c0_i32_1 = arith.constant 0 : i32
    return %arg0, %c0_i32, %c0_i32_0 : i32, i32, i32
  }
  func.func @transform_2(%arg0: i32, %arg1: i32) -> (i32, i32, i32) {
    %c0_i32 = arith.constant 0 : i32
    %c0_i32_0 = arith.constant 0 : i32
    %c0_i32_1 = arith.constant 0 : i32
    return %arg0, %c0_i32, %c0_i32_0 : i32, i32, i32
  }
  func.func @transform_3(%arg0: i32, %arg1: i32) -> (i32, i32, i32) {
    %c0_i32 = arith.constant 0 : i32
    %c0_i32_0 = arith.constant 0 : i32
    return %arg0, %arg1, %c0_i32 : i32, i32, i32
  }
  func.func @transform_4(%arg0: i32, %arg1: i32) -> (i32, i32, i32) {
    %c0_i32 = arith.constant 0 : i32
    %c0_i32_0 = arith.constant 0 : i32
    return %arg0, %arg1, %c0_i32 : i32, i32, i32
  }
  func.func @transform_5(%arg0: i32, %arg1: i32) -> (i32, i32, i32) {
    %c0_i32 = arith.constant 0 : i32
    %c0_i32_0 = arith.constant 0 : i32
    return %arg0, %arg1, %c0_i32 : i32, i32, i32
  }
}

</mosaic_0001>

<bundles_post_ra>
// kernel: tpu_custom_call.1
= control target key start
LH: loop header
LB: loop body
LE: loop exit
PB: predicated region body
PF: predicated region fallthrough
CT: control target
= control target key end

     0   :  { %11 = vsyncpa [#allocation3], 0  ;;  %s1290_s0 = inlined_call_operand.vmem [shape: f32[4,8,32], index: 0, kind: input, shape index: {}]   ;;  %s1291_s1 = inlined_call_operand.hbm [shape: f32[4,8,32], index: 1, kind: input, shape index: {}]   ;;  %s1292_s2 = inlined_call_operand.hbm [shape: f32[4,8,32], index: 2, kind: input, shape index: {}]   ;;  %s1293_s3 = inlined_call_operand.vmem [shape: s32[4,8,8], index: 3, kind: input, shape index: {}]   ;;  %s1294_s4 = inlined_call_operand.hbm [shape: f32[4,8,32], index: 4, kind: output, shape index: {0}]   ;;  %s1295_s5 = inlined_call_operand.hbm [shape: f32[4,8,8], index: 5, kind: output, shape index: {1}]  }
   0x1   :  { %13 = vsyncpa [#allocation3 + $0x1], 0 }
   0x2   :  { %14 = vsyncpa [#allocation6], 0 }
   0x3   :  { %16 = vsyncpa [#allocation6 + $0x1], 0 }
   0x4   :  { %17 = vsyncpa [#allocation4], 0 }
   0x5   :  { %19 = vsyncpa [#allocation4 + $0x1], 0 }
   0x6   :  { %20 = vsyncpa [#allocation9], 0 }
   0x7   :  { %22 = vsyncpa [#allocation9 + $0x1], 0  ;;  %s1016_s18 = smov 0   ;;  %s1018_s19 = smov 0  }
   0x8   :  { %s1020_s20 = smov 0   ;;  %s1022_s21 = smov 0  }
   0x9   :  { %s1024_s22 = smov 0   ;;  %s1026_s23 = smov 0  }
   0xa LB: > { %s683_s24 = sadd.s32 4294967295, %s978_s23   ;;  %s684_s25 = sadd.s32 4294967294, %s978_s23   ;;  %s978_s23 = sphi %s1026_s23, %s28_s23   ;;  %s974_s22 = sphi %s1024_s22, %s1314_s22   ;;  %s970_s21 = sphi %s1022_s21, %s1313_s21   ;;  %s966_s20 = sphi %s1020_s20, %s1312_s20   ;;  %s962_s19 = sphi %s1018_s19, %s1311_s19   ;;  %s958_s18 = sphi %s1016_s18, %s1310_s18  }
   0xb   : > { %s40_s26 = sadd.s32 1, %s974_s22  ;;  %s75_s27 = sadd.s32 1, %s966_s20 }
   0xc   : > { %p42_p0 = scmp.ge.s32.totalorder %s40_s26, 4  ;;  %p82_p1 = scmp.ne.s32.totalorder %s966_s20, %s962_s19 }
   0xd   : > { %p83_p2 = scmp.eq.s32.totalorder %s978_s23, 0  ;;  %p88_p3 = scmp.ne.s32.totalorder %s962_s19, %s958_s18 }
   0xe   : > { %s1316_s26 = smov (%p42_p0, %s40_s26), 0  ;;  %p89_p5 = scmp.eq.s32.totalorder %s683_s24, 0 }
   0xf   : > { %p1057_p4 = por %p83_p2, %p82_p1  ;;  %s72_s29 = ssub.s32 %s974_s22, %s1316_s26 }
  0x10   : > { %p168_p6 = scmp.eq.s32.totalorder %s683_s24, 3  ;;  %p73_p7 = scmp.eq.s32.totalorder %s72_s29, 0 }
  0x11   : > { %p1063_p8 = por %p89_p5, %p88_p3  ;;  %p174_p10 = scmp.eq.s32.totalorder %s684_s25, 3 }
  0x12   : > { %p1067_p9 = por %p168_p6, %p82_p1  ;;  %p744_p12 = scmp.lt.s32.totalorder %s978_s23, 4 }
  0x13   : > { %s1299_s30 = scalar_select %p1063_p8, 1, 0 }
  0x14   : > { %s1300_s6 = scalar_select %p1067_p9, 1, 0 }
  0x15   : > { %s1072_s7 = scalar_select %p73_p7, %s966_s20, %s75_s27  }
  0x16   : > { %p1074_p11 = por %p174_p10, %p88_p3  ;;  %s1080_s9 = sand.u32 1, %s966_s20  }
  0x17   : > { %s687_s10 = sshll.u32 %s1080_s9, 3  ;;  %s688_s11 = sshll.u32 %s974_s22, 7 }
  0x18   : > { %s1301_s8 = scalar_select %p1074_p11, 1, 0 }
  0x19   : > { %s1089_s14 = scalar_lea.hbm %s1291_s1, %s688_s11  ;;  %s236_s15 = scalar_lea.vmem [#allocation2], %s687_s10 }
  0x1a   : > { %s243_s16 = sshll.u32 %s236_s15, 4  ;;  %p1097_p13 = pnand %p744_p12, %p1057_p4  ;;  %s1093_s16 = int_to_ptr.vmem [resolvable:$true] %s243_s16 }
  0x1b   : > { %s233_s24 = scalar_lea.sflag [#allocation3], %s1080_s9  ;;  %s800_s25 = scalar_lea.hbm %s1089_s14, 128 }
  0x1c   : > { %p801_p2 = scmp.ne.s32.totalorder %s1089_s14, %s800_s25  ;;  %p802_p3 = pneg %p1097_p13 }
  0x1d   : > { %s805_s28 = scalar_lea.hbm %s1291_s1, 512  ;;  %p806_p4 = scmp.lt.u32.totalorder %s1089_s14, %s1291_s1 }
  0x1e   : > { %p803_p5 = pnand %p802_p3, %p801_p2  ;;  %p807_p7 = scmp.lt.u32.totalorder %s805_s28, %s800_s25 }
  0x1f   : > { %p809_p12 = scmp.lt.u32.totalorder %s800_s25, %s1089_s14 }
  0x20   : > { %p804_p6 = pneg %p803_p5  ;;  %p808_p10 = por %p807_p7, %p806_p4 }
  0x22   : > { %p810_p0 = por %p809_p12, %p808_p10 }
  0x24   : > { %p811_p1 = pnand %p810_p0, %p804_p6 }
  0x26   : > { %814 = shalt.err (!%p811_p1)
}
  0x27   : > { %s815_s15 = scalar_lea.vmem %s1093_s16, 128  ;;  %s980_s27 = smov [#allocation2]  }
  0x28   : > { %p816_p2 = scmp.ne.s32.totalorder %s1093_s16, %s815_s15  ;;  %s820_s29 = sshll.u32 %s980_s27, 4  ;;  %s821_s29 = int_to_ptr.vmem [resolvable:$false] %s820_s29 }
  0x29   : > { %s822_s12 = scalar_lea.vmem %s821_s29, 256  ;;  %p823_p9 = scmp.lt.s32.totalorder %s1093_s16, %s821_s29 }
  0x2a   : > { %p818_p5 = pnand %p816_p2, %p802_p3  ;;  %p824_p4 = scmp.lt.s32.totalorder %s822_s12, %s815_s15 }
  0x2c   : > { %p819_p11 = pneg %p818_p5  ;;  %p825_p7 = por %p824_p4, %p823_p9 }
  0x2e   : > { %p826_p10 = pnand %p825_p7, %p819_p11 }
  0x30   : > { %829 = shalt.err (!%p826_p10)
}
  0x31   : > { %733 = dma.hbm_to_vmem [thread:$0]  (!%p1097_p13), %s1089_s14, 128, %s1093_s16, %s233_s24  }
  0x32   : > { %p1303_p0 = scmp.lt.s32.totalorder %s978_s23, 5  ;;  %p1304_p1 = scmp.ge.s32.totalorder %s978_s23, 1 }
  0x33   : > { %s1142_s15 = scalar_lea.hbm %s1292_s2, %s688_s11  ;;  %s254_s27 = scalar_lea.vmem [#allocation5], %s687_s10 }
  0x34   : > { %p1133_p6 = pnand %p1304_p1, %p1303_p0  ;;  %s261_s29 = sshll.u32 %s254_s27, 4  ;;  %s262_s29 = int_to_ptr.vmem [resolvable:$true] %s261_s29 }
  0x35   : > { %s251_s14 = scalar_lea.sflag [#allocation6], %s1080_s9  ;;  %s830_s16 = scalar_lea.hbm %s1142_s15, 128 }
  0x36   : > { %s1305_s25 = scalar_select %p1133_p6, 1, 0 }
  0x37   : > { %p831_p9 = scmp.ne.s32.totalorder %s1142_s15, %s830_s16  ;;  %s835_s11 = scalar_lea.hbm %s1292_s2, 512 }
  0x38   : > { %p836_p2 = scmp.lt.u32.totalorder %s1142_s15, %s1292_s2  ;;  %p837_p5 = scmp.lt.u32.totalorder %s835_s11, %s830_s16 }
  0x39   : > { %p833_p11 = pnand %p831_p9, %p802_p3  ;;  %p839_p7 = scmp.lt.u32.totalorder %s830_s16, %s1142_s15 }
  0x3a   : > { %p838_p4 = por %p837_p5, %p836_p2 }
  0x3b   : > { %p834_p12 = pneg %p833_p11 }
  0x3c   : > { %p840_p10 = por %p839_p7, %p838_p4 }
  0x3e   : > { %p841_p0 = pnand %p840_p10, %p834_p12 }
  0x40   : > { %844 = shalt.err (!%p841_p0)
}
  0x41   : > { %s845_s9 = scalar_lea.vmem %s262_s29, 128  ;;  %s981_s10 = smov [#allocation5]  }
  0x42   : > { %p846_p1 = scmp.ne.s32.totalorder %s262_s29, %s845_s9  ;;  %s850_s27 = sshll.u32 %s981_s10, 4  ;;  %s851_s27 = int_to_ptr.vmem [resolvable:$false] %s850_s27 }
  0x43   : > { %s852_s24 = scalar_lea.vmem %s851_s27, 256  ;;  %p853_p8 = scmp.lt.s32.totalorder %s262_s29, %s851_s27 }
  0x44   : > { %p848_p9 = pnand %p846_p1, %p802_p3  ;;  %p854_p6 = scmp.lt.s32.totalorder %s852_s24, %s845_s9 }
  0x46   : > { %p849_p11 = pneg %p848_p9  ;;  %p855_p2 = por %p854_p6, %p853_p8 }
  0x48   : > { %p856_p5 = pnand %p855_p2, %p849_p11 }
  0x4a   : > { %859 = shalt.err (!%p856_p5)
}
  0x4b   : > { %736 = dma.hbm_to_vmem [thread:$0]  (!%p1097_p13), %s1142_s15, 128, %s262_s29, %s251_s14  }
  0x4c   : > { %p1306_p12 = scmp.ne.s32.totalorder %s1305_s25, 0 }
  0x4d   : > { %s1169_s16 = sand.u32 (!%p1306_p12), 1, %s962_s19   ;;  %p1307_p8 = scmp.ne.s32.totalorder (!%p1306_p12), %s1299_s30, 0 }
  0x4e   : > { %280 = sbr.rel (%p1306_p12) target bundleno = 700 (0x2bc), region = 36  ;;  %s1172_s12 = sshll.u32 (!%p1306_p12), %s1169_s16, 3 }
  0x4f   : > { %s283_s11 = scalar_lea.sflag (!%p1306_p12), [#allocation3], %s1169_s16  ;;  %s286_s28 = scalar_lea.vmem (!%p1306_p12), [#allocation2], %s1172_s12 }
  0x55   : > { %941 = dma.done.wait (%p1307_p8), %s283_s11, 128  }
  0x56   : > { %943 = vsyncadd (%p1307_p8), %s283_s11, 4294967168  ;;  %s292_s17 = scalar_lea.sflag [#allocation6], %s1169_s16  ;;  %s295_s25 = scalar_lea.vmem [#allocation5], %s1172_s12 }
  0x57   : > { %945 = dma.done.wait (%p1307_p8), %s292_s17, 128  }
  0x58   : > { %947 = vsyncadd (%p1307_p8), %s292_s17, 4294967168  ;;  %p346_p13 = scmp.lt.s32.totalorder %s970_s21, 3  ;;  %v982_v0 = vmov 0.0   ;;  %vm983_vm0 = vmmov 0   ;;  %v364_v1 = vld [vmem:[%s286_s28] sm:$0xff]  ;;  %vm370_vm1 = vcmask 261120  }
  0x59   : > { %710 = vmatprep.subr.bf16.mxu0 %v982_v0  ;;  %712 = vmatprep.mubr.msk.bf16.mxu0 %vm983_vm0, %v982_v0  ;;  %v365_v3 = vpack.c.bf16 %v364_v1, %v364_v1  ;;  %vm418_vm3 = vcmask 64512   ;;  %v366_v14 = vld [vmem:[%s295_s25] sm:$0xff]  ;;  %vm429_vm4 = vcmask 1043456   ;;  %s702_s24 = sshll.u32 %s970_s21, 7  ;;  %s345_s11 = scalar_lea.vmem [#allocation8], %s1172_s12 }
  0x5a   : > { %s347_s15 = scalar_select %p346_p13, %s970_s21, 3  ;;  %716 = vmatprep.subr.bf16.mxu1 %v982_v0  ;;  %718 = vmatprep.mubr.msk.bf16.mxu1 %vm983_vm0, %v982_v0  ;;  %v367_v15 = vpack.c.bf16 %v366_v14, %v366_v14 }
  0x5b   : > { %v375_v4 = vsel %vm370_vm1, %v365_v3, 0  ;;  %s518_s28 = sshll.u32 %s345_s11, 4  ;;  %p1308_p6 = scmp.ne.s32.totalorder %s1300_s6, 0  ;;  %s1210_s28 = int_to_ptr.vmem [resolvable:$true] %s518_s28 }
  0x5c   : > { %s696_s29 = sshll.u32 %s347_s15, 3  ;;  %711 = vmatpush3.bf16.xpose.msra.mxu0 %v375_v4  ;;  %v431_v16 = vsel %vm429_vm4, %v367_v15, 0  ;;  %s1208_s15 = scalar_lea.hbm %s1295_s5, %s702_s24 }
  0x5d   : > { %s352_s9 = scalar_lea.vmem %s1290_s0, %s696_s29  ;;  %s359_s27 = scalar_lea.vmem %s1293_s3, %s696_s29  ;;  %717 = vmatpush3.bf16.msra.mxu1 %v431_v16 }
  0x5e   : > { %v361_v2 = vld [vmem:[%s352_s9] sm:$0xff]  ;;  %s490_s29 = scalar_lea.sflag [#allocation9], %s1169_s16  ;;  %s860_s14 = scalar_lea.vmem %s1210_s28, 128 }
  0x5f   : > { %v362_v5 = vmul.f32 0.17677669, %v361_v2  ;;  %v368_v7 = vld [vmem:[%s359_s27] sm:$0xff]  ;;  %p861_p3 = scmp.ne.s32.totalorder %s1210_s28, %s860_s14  ;;  %s984_s13 = smov [#allocation8]  }
  0x60   : > { %vm369_vm2 = vcmp.ne.s32.totalorder %v368_v7, 0  ;;  %s864_s9 = sshll.u32 %s984_s13, 4  ;;  %s865_s9 = int_to_ptr.vmem [resolvable:$false] %s864_s9 }
  0x61   : > { %v363_v6 = vpack.c.bf16 %v362_v5, %v362_v5  ;;  %p862_p4 = pnand %p861_p3, %p1308_p6  ;;  %s866_s30 = scalar_lea.vmem %s865_s9, 256 }
  0x62   : > { %p867_p10 = scmp.lt.s32.totalorder %s1210_s28, %s865_s9  ;;  %p868_p0 = scmp.lt.s32.totalorder %s866_s30, %s860_s14 }
  0x63   : > { %713 = vmatmul.mubr.msk.bf16.vlgmr.msra.gmra.mrb[0].mxu0 %vm370_vm1, %v363_v6  ;;  %p863_p7 = pneg %p862_p4 }
  0x64   : > { %p869_p1 = por %p868_p0, %p867_p10 }
  0x66   : > { %p870_p9 = pnand %p869_p1, %p863_p7 }
 0x136   : > { %v411_v8 = vpop.f32.mrb[0].mxu0 }
 0x137   : > { %v417_v9 = vsel %vm369_vm2, -1e+09, %v411_v8  ;;  %v714_v10 = vpop.f32.mrb[1].mxu0 }
 0x138   : > { %v414_v11 = vpop.f32.mrb[2].mxu0  ;;  %v419_v12 = vsel %vm418_vm3, %v417_v9, -inf }
 0x139   : > { %420 = vmax.xlane.f32.xlu0 %v419_v12  ;;  %v715_v13 = vpop.f32.mrb[3].mxu0 }
 0x1c6   : > { %v421_v17 = vpop.xlane.xlu0 %420 }
 0x1c7   : > { %v422_v18 = vsub.f32 %v417_v9, %v421_v17 }
 0x1c9   : > { %v423_v19 = vmul.f32 1.442695, %v422_v18 }
 0x1cb   : > { %796 = vpow2.f32 %v423_v19 }
 0x1d5   : > { %v797_v20 = vpop.eup %796 }
 0x1d6   : > { %v473_v21 = vsel %vm418_vm3, %v797_v20, 0.0  ;;  %v425_v22 = vpack.c.bf16 %v797_v20, %v797_v20 }
 0x1d7   : > { %474 = vadd.xlane.f32.xlu0 %v473_v21 }
 0x1d8   : > { %719 = vmatmul.mubr.msk.bf16.vlgmr.msra.gmra.mrb[0].mxu1 %vm418_vm3, %v425_v22 }
 0x264   : > { %v475_v23 = vpop.xlane.xlu0 %474 }
 0x265   : > { %798 = vrcp.f32 %v475_v23 }
 0x26f   : > { %v799_v24 = vpop.eup %798 }
 0x270   : > { %v477_v25 = vmul.f32 %v799_v24, %v475_v23 }
 0x272   : > { %v478_v26 = vsub.f32 2.0, %v477_v25 }
 0x274   : > { %v479_v27 = vmul.f32 %v799_v24, %v478_v26 }
 0x276   : > { %v482_v28 = vmul.f32 %v797_v20, %v479_v27 }
 0x278   : > { %483 = vst.msk [vmem:[%s345_s11] sm:$0xff] %vm418_vm3, %v482_v28 }
 0x279   : > { %873 = shalt.err (!%p870_p9)
}
 0x27a   : > { %s874_s10 = scalar_lea.hbm %s1208_s15, 128  ;;  %s878_s17 = scalar_lea.hbm %s1295_s5, 512 }
 0x27b   : > { %p875_p11 = scmp.ne.s32.totalorder %s1208_s15, %s874_s10  ;;  %p879_p12 = scmp.lt.u32.totalorder %s1208_s15, %s1295_s5 }
 0x27c   : > { %p880_p8 = scmp.lt.u32.totalorder %s878_s17, %s874_s10  ;;  %p882_p3 = scmp.lt.u32.totalorder %s874_s10, %s1208_s15 }
 0x27d   : > { %p876_p2 = pnand %p875_p11, %p1308_p6 }
 0x27e   : > { %p881_p13 = por %p880_p8, %p879_p12 }
 0x27f   : > { %p877_p5 = pneg %p876_p2 }
 0x280   : > { %p883_p4 = por %p882_p3, %p881_p13 }
 0x282   : > { %p884_p7 = pnand %p883_p4, %p877_p5 }
 0x284   : > { %887 = shalt.err (!%p884_p7)
}
 0x285   : > { %727 = dma.vmem_to_hbm [thread:$0]  (%p1308_p6), %s1210_s28, 128, %s1208_s15, %s490_s29  }
 0x286   : > { %s338_s14 = scalar_lea.vmem [#allocation7], %s1172_s12  ;;  %s1241_s27 = scalar_lea.hbm %s1294_s4, %s702_s24 }
 0x287   : > { %s504_s9 = sshll.u32 %s338_s14, 4  ;;  %s485_s12 = scalar_lea.sflag [#allocation4], %s1169_s16  ;;  %s1243_s9 = int_to_ptr.vmem [resolvable:$true] %s504_s9 }
 0x288   : > { %s888_s28 = scalar_lea.vmem %s1243_s9, 128  ;;  %s985_s21 = smov [#allocation7]  }
 0x289   : > { %p889_p10 = scmp.ne.s32.totalorder %s1243_s9, %s888_s28  ;;  %s892_s15 = sshll.u32 %s985_s21, 4  ;;  %s893_s15 = int_to_ptr.vmem [resolvable:$false] %s892_s15 }
 0x28a   : > { %s894_s24 = scalar_lea.vmem %s893_s15, 256  ;;  %p895_p9 = scmp.lt.s32.totalorder %s1243_s9, %s893_s15 }
 0x28b   : > { %p890_p0 = pnand %p889_p10, %p1308_p6  ;;  %p896_p11 = scmp.lt.s32.totalorder %s894_s24, %s888_s28 }
 0x28d   : > { %p891_p1 = pneg %p890_p0  ;;  %p897_p2 = por %p896_p11, %p895_p9 }
 0x28f   : > { %p898_p5 = pnand %p897_p2, %p891_p1 }
 0x2ab   : > { %v467_v29 = vpop.f32.mrb[0].mxu1 }
 0x2ac   : > { %v480_v30 = vmul.f32 %v479_v27, %v467_v29  ;;  %v720_v31 = vpop.f32.mrb[1].mxu1 }
 0x2ad   : > { %v470_v32 = vpop.f32.mrb[2].mxu1 }
 0x2ae   : > { %v721_v33 = vpop.f32.mrb[3].mxu1  ;;  %481 = vst.msk [vmem:[%s338_s14] sm:$0xff] %vm370_vm1, %v480_v30 }
 0x2af   : > { %901 = shalt.err (!%p898_p5)
}
 0x2b0   : > { %s902_s16 = scalar_lea.hbm %s1241_s27, 128  ;;  %s906_s17 = scalar_lea.hbm %s1294_s4, 512 }
 0x2b1   : > { %p903_p12 = scmp.ne.s32.totalorder %s1241_s27, %s902_s16  ;;  %p907_p3 = scmp.lt.u32.totalorder %s1241_s27, %s1294_s4 }
 0x2b2   : > { %p908_p4 = scmp.lt.u32.totalorder %s906_s17, %s902_s16  ;;  %p910_p10 = scmp.lt.u32.totalorder %s902_s16, %s1241_s27 }
 0x2b3   : > { %p904_p8 = pnand %p903_p12, %p1308_p6 }
 0x2b4   : > { %p909_p7 = por %p908_p4, %p907_p3 }
 0x2b5   : > { %p905_p13 = pneg %p904_p8 }
 0x2b6   : > { %p911_p0 = por %p910_p10, %p909_p7 }
 0x2b8   : > { %p912_p1 = pnand %p911_p0, %p905_p13 }
 0x2ba   : > { %915 = shalt.err (!%p912_p1)
}
 0x2bb   : > { %726 = dma.vmem_to_hbm [thread:$0]  (%p1308_p6), %s1243_s9, 128, %s1241_s27, %s485_s12  }
 0x2bc PF: > { %p745_p9 = scmp.ge.s32.totalorder %s978_s23, 2  ;;  %s530_s14 = sand.u32 1, %s958_s18  }
 0x2bd   : > { %p1309_p11 = scmp.ne.s32.totalorder %s1301_s8, 0  ;;  %s531_s30 = scalar_lea.sflag [#allocation4], %s530_s14 }
 0x2bf   : > { %p738_p2 = pnand %p745_p9, %p1309_p11 }
 0x2c1   : > { %949 = dma.done.wait (!%p738_p2), %s531_s30, 128  }
 0x2c2   : > { %951 = vsyncadd (!%p738_p2), %s531_s30, 4294967168  ;;  %s540_s10 = scalar_lea.sflag [#allocation9], %s530_s14 }
 0x2c3   : > { %953 = dma.done.wait (!%p738_p2), %s540_s10, 128  }
 0x2c4   : > { %955 = vsyncadd (!%p738_p2), %s540_s10, 4294967168  ;;  %s28_s23 = sadd.s32 1, %s978_s23   ;;  %s1310_s18 = smov %s962_s19 }
 0x2c5   : > { %p25_p5 = scmp.ge.s32.totalorder %s28_s23, 6   ;;  %s1311_s19 = smov %s966_s20 }
 0x2c6   : > { %s1312_s20 = smov %s1072_s7  ;;  %s1313_s21 = smov %s974_s22 }
 0x2c7   : > { %s1314_s22 = smov %s1316_s26  ;;  %27 = sbr.rel (!%p25_p5) target bundleno = 10 (0xa), region = 117 }
 0x2ce   :  { %545 = vsyncpa [#allocation3], 1 }
 0x2cf   :  { %547 = vsyncpa [#allocation3 + $0x1], 1 }
 0x2d0   :  { %548 = vsyncpa [#allocation6], 1 }
 0x2d1   :  { %550 = vsyncpa [#allocation6 + $0x1], 1 }
 0x2d2   :  { %551 = vsyncpa [#allocation4], 1 }
 0x2d3   :  { %553 = vsyncpa [#allocation4 + $0x1], 1 }
 0x2d4   :  { %554 = vsyncpa [#allocation9], 1 }
 0x2d5   :  { %556 = vsyncpa [#allocation9 + $0x1], 1 }

</bundles_post_ra>
